<compile_context>
chip_gen: v7x
topology: tpu7x:2x2x1
jax: 0.10.0
libtpu: 0.0.40
codegen_flags: <defaults>
</compile_context>

<pallas_src>
import numpy as np
import jax
import jax.numpy as jnp
from jax import lax
from jax.experimental import pallas as pl
from jax.experimental.pallas import tpu as pltpu


_THRESH = 0.2


# ----------------------------------------------------------------------------
# Pallas kernel: node-decoder MLP + fused cosine-sim threshold mask + top-2
# ----------------------------------------------------------------------------
def _make_kernel(n_nodes):
    """n_nodes is the un-padded node count (static at trace time)."""

    def kernel(z_ref, w1_ref, b1_ref, w2_ref, b2_ref,
               x_ref, mask_ref, top2_ref):
        z = z_ref[...]                                            # [Np, D] f32

        # --- node decoder: Linear -> ReLU -> Linear (MXU, fp32 accumulate) ---
        h = jnp.dot(z, w1_ref[...], preferred_element_type=jnp.float32)
        h = jnp.maximum(h + b1_ref[...], 0.0)                     # b1: [1, H]
        x = jnp.dot(h, w2_ref[...], preferred_element_type=jnp.float32)
        x_ref[...] = (x + b2_ref[...]).astype(x_ref.dtype)        # b2: [1, O]

        # --- pairwise cosine similarity ---------------------------------
        # Normalize once: 1/max(||z||, eps) == rsqrt(max(||z||^2, eps^2)).
        ss = jnp.sum(z * z, axis=-1, keepdims=True)               # [Np, 1] XLU
        z_hat = z * lax.rsqrt(jnp.maximum(ss, 1e-16))             # EUP + VPU
        # gram = z_hat @ z_hat^T without materializing a transpose.
        sim = lax.dot_general(z_hat, z_hat,
                              dimension_numbers=(((1,), (1,)), ((), ())),
                              preferred_element_type=jnp.float32)  # [Np, Np]

        rows = lax.broadcasted_iota(jnp.int32, sim.shape, 0)
        cols = lax.broadcasted_iota(jnp.int32, sim.shape, 1)
        in_range = cols < n_nodes                                 # padded cols

        # Upper-triangle threshold mask (padded rows produce sim == 0 -> False,
        # and are sliced off on the host anyway).
        mask = (rows < cols) & in_range & (sim > _THRESH)
        mask_ref[...] = mask.astype(jnp.int32)

        # Per-row top-2 over j != i (excluding padded columns).
        neg = jnp.float32(-1e30)
        big = jnp.float32(1e9)
        invalid = (cols == rows) | jnp.logical_not(in_range)
        s = jnp.where(invalid, neg, sim)
        colf = cols.astype(jnp.float32)

        m1 = jnp.max(s, axis=-1, keepdims=True)                   # [Np, 1]
        i1 = jnp.min(jnp.where(s == m1, colf, big), axis=-1, keepdims=True)
        s2 = jnp.where(colf == i1, neg, s)
        m2 = jnp.max(s2, axis=-1, keepdims=True)
        i2 = jnp.min(jnp.where(s2 == m2, colf, big), axis=-1, keepdims=True)

        sel = lax.broadcasted_iota(jnp.int32, (sim.shape[0], 2), 1)
        top2_ref[...] = jnp.where(sel == 0, i1, i2).astype(jnp.int32)

    return kernel


def _round_up(x, m):
    return ((x + m - 1) // m) * m


# ----------------------------------------------------------------------------
# Jitted device path: pad rows -> pallas_call -> slice.  One dispatch.
# ----------------------------------------------------------------------------
@jax.jit
def graph_decoder_device(z, w1, b1, w2, b2):
    """Returns (x_recon [N,out] f32, mask [N,N] int32, top2 [N,2] int32)."""
    n, d = z.shape
    hidden = w1.shape[1]
    out_dim = w2.shape[1]

    # Only the row (sublane) dim needs alignment for fp32; lane dims are left
    # unpadded because every block below spans the full array.
    n_pad = max(_round_up(n, 8), 8)
    z_p = jnp.pad(z, ((0, n_pad - n), (0, 0))) if n_pad != n else z

    def full(shape):
        return pl.BlockSpec(shape, lambda: tuple(0 for _ in shape),
                            memory_space=pltpu.MemorySpace.VMEM)

    x_p, mask_p, top2_p = pl.pallas_call(
        _make_kernel(n),
        out_shape=(
            jax.ShapeDtypeStruct((n_pad, out_dim), jnp.float32),
            jax.ShapeDtypeStruct((n_pad, n_pad), jnp.int32),
            jax.ShapeDtypeStruct((n_pad, 2), jnp.int32),
        ),
        grid=(),
        in_specs=[
            full((n_pad, d)),
            full((d, hidden)),
            full((1, hidden)),
            full((hidden, out_dim)),
            full((1, out_dim)),
        ],
        out_specs=(
            full((n_pad, out_dim)),
            full((n_pad, n_pad)),
            full((n_pad, 2)),
        ),
        compiler_params=pltpu.CompilerParams(
            vmem_limit_bytes=32 * 1024 * 1024),   # safe on all gens; tiny use here
    )(z_p, w1, b1, w2, b2)

    return x_p[:n], mask_p[:n, :n], top2_p[:n]


# ----------------------------------------------------------------------------
# Forward: kernel (fused mask/top-2) + host packing of the variable-length
# edge_index.  Only a small int mask + [N,2] table cross the link.
# ----------------------------------------------------------------------------
def graph_decoder_forward(z, params):
    w1, b1, w2, b2 = params
    x_recon, mask, top2 = graph_decoder_device(z, w1, b1, w2, b2)
    n = z.shape[0]

    mask_np = np.asarray(mask, dtype=bool)
    if mask_np.any():
        pairs = np.argwhere(mask_np).astype(np.int32)     # (i, j), i<j, row-major
        edges = np.empty((2 * pairs.shape[0], 2), dtype=np.int32)
        edges[0::2] = pairs
        edges[1::2] = pairs[:, ::-1]
    else:
        top2_np = np.asarray(top2).astype(np.int32)        # [n, 2]
        rows = np.repeat(np.arange(n, dtype=np.int32), 2)
        cols = top2_np.reshape(-1)
        edges = np.empty((2 * rows.shape[0], 2), dtype=np.int32)
        edges[0::2, 0] = rows
        edges[0::2, 1] = cols
        edges[1::2, 0] = cols
        edges[1::2, 1] = rows

    edge_index = (edges.T.copy() if edges.size
                  else np.empty((2, 0), dtype=np.int32))
    return x_recon, jnp.asarray(edge_index)


# ----------------------------------------------------------------------------
# Demo / self-check
# ----------------------------------------------------------------------------
if __name__ == "__main__":
    num_nodes, latent_dim, hidden, out_node_dim = 8, 16, 64, 12

    key = jax.random.PRNGKey(0)
    kz, k1, k2, k3, k4 = jax.random.split(key, 5)

    z = jax.random.normal(kz, (num_nodes, latent_dim), dtype=jnp.float32)

    lim1 = 1.0 / np.sqrt(latent_dim)
    lim2 = 1.0 / np.sqrt(hidden)
    w1 = jax.random.uniform(k1, (latent_dim, hidden), jnp.float32, -lim1, lim1)
    b1 = jax.random.uniform(k2, (1, hidden), jnp.float32, -lim1, lim1)
    w2 = jax.random.uniform(k3, (hidden, out_node_dim), jnp.float32, -lim2, lim2)
    b2 = jax.random.uniform(k4, (1, out_node_dim), jnp.float32, -lim2, lim2)

    x_recon, edge_index = graph_decoder_forward(z, (w1, b1, w2, b2))
    x_recon = jax.block_until_ready(x_recon)

    assert x_recon.shape == (num_nodes, out_node_dim)
    assert edge_index.shape[0] == 2

    # --- node decoder vs pure-JAX reference ---
    h_ref = jnp.maximum(z @ w1 + b1, 0.0)
    x_ref = h_ref @ w2 + b2
    assert np.allclose(np.asarray(x_recon), np.asarray(x_ref),
                       rtol=1e-5, atol=1e-5)

    # --- fused mask / top-2 vs fp32 numpy reference -------------------------
    _, mask_k, top2_k = graph_decoder_device(z, w1, b1, w2, b2)
    mask_k = np.asarray(mask_k, dtype=bool)
    top2_k = np.asarray(top2_k).astype(np.int64)

    zn = np.asarray(z, dtype=np.float32)
    norms = np.linalg.norm(zn, axis=1, keepdims=True)
    zhat = zn / np.maximum(norms, 1e-8)
    sim_ref = zhat @ zhat.T

    iu = np.triu(np.ones((num_nodes, num_nodes), dtype=bool), k=1)
    mask_ref = iu & (sim_ref > _THRESH)
    settled = np.abs(sim_ref - _THRESH) > 1e-4          # ignore knife-edge pairs
    assert np.array_equal(mask_k & settled, mask_ref & settled)

    sim_nd = np.where(np.eye(num_nodes, dtype=bool), -np.inf, sim_ref)
    order = np.argsort(-sim_nd, axis=1, kind="stable")
    top2_ref = order[:, :2]
    picked = np.take_along_axis(sim_nd, top2_k, axis=1)
    best = np.take_along_axis(sim_nd, top2_ref, axis=1)
    assert np.allclose(picked, best, rtol=1e-4, atol=1e-4)

    # --- host packing reproduces the module's nested-loop ordering ----------
    edges_ref = []
    if mask_k.any():
        for i in range(num_nodes):
            for j in range(i + 1, num_nodes):
                if mask_k[i, j]:
                    edges_ref.append([i, j])
                    edges_ref.append([j, i])
    else:
        for i in range(num_nodes):
            for j in top2_k[i]:
                edges_ref.append([i, int(j)])
                edges_ref.append([int(j), i])
    edge_ref = (np.asarray(edges_ref, dtype=np.int32).T if edges_ref
                else np.empty((2, 0), dtype=np.int32))
    assert np.array_equal(np.asarray(edge_index), edge_ref)

    print("KERNEL_OK")
</pallas_src>

<mosaic_0001>
module attributes {stable_mosaic.version = 11 : i64} {
  func.func @kernel(%arg0: memref<8x16xf32, #tpu.memory_space<vmem>>, %arg1: memref<16x64xf32, #tpu.memory_space<vmem>>, %arg2: memref<1x64xf32, #tpu.memory_space<vmem>>, %arg3: memref<64x12xf32, #tpu.memory_space<vmem>>, %arg4: memref<1x12xf32, #tpu.memory_space<vmem>>, %arg5: memref<8x12xf32, #tpu.memory_space<vmem>>, %arg6: memref<8x8xi32, #tpu.memory_space<vmem>>, %arg7: memref<8x2xi32, #tpu.memory_space<vmem>>) attributes {dimension_semantics = [], scalar_prefetch = 0 : i64, scratch_operands = 0 : i64, tpu.core_type = #tpu.core_type<tc>} {
    %c0 = arith.constant 0 : index
    %c0_0 = arith.constant 0 : index
    %0 = vector.load %arg0[%c0, %c0_0] : memref<8x16xf32, #tpu.memory_space<vmem>>, vector<8x16xf32>
    %c0_1 = arith.constant 0 : index
    %c0_2 = arith.constant 0 : index
    %1 = vector.load %arg1[%c0_1, %c0_2] : memref<16x64xf32, #tpu.memory_space<vmem>>, vector<16x64xf32>
    %cst = arith.constant dense<0.000000e+00> : vector<8x64xf32>
    %2 = tpu.matmul %0, %1, %cst {dimension_numbers = #tpu.dot_dimension_numbers<[1], [0], [0], [1], [0, 0, 1, 1], [], []>} : vector<8x16xf32>, vector<16x64xf32>, vector<8x64xf32> -> vector<8x64xf32>
    %c0_3 = arith.constant 0 : index
    %c0_4 = arith.constant 0 : index
    %3 = vector.load %arg2[%c0_3, %c0_4] : memref<1x64xf32, #tpu.memory_space<vmem>>, vector<1x64xf32>
    %4 = vector.broadcast %3 : vector<1x64xf32> to vector<8x64xf32>
    %5 = arith.addf %2, %4 : vector<8x64xf32>
    %cst_5 = arith.constant 0.000000e+00 : f32
    %6 = vector.broadcast %cst_5 : f32 to vector<8x64xf32>
    %7 = arith.maximumf %5, %6 : vector<8x64xf32>
    %c0_6 = arith.constant 0 : index
    %c0_7 = arith.constant 0 : index
    %8 = vector.load %arg3[%c0_6, %c0_7] : memref<64x12xf32, #tpu.memory_space<vmem>>, vector<64x12xf32>
    %cst_8 = arith.constant dense<0.000000e+00> : vector<8x12xf32>
    %9 = tpu.matmul %7, %8, %cst_8 {dimension_numbers = #tpu.dot_dimension_numbers<[1], [0], [0], [1], [0, 0, 1, 1], [], []>} : vector<8x64xf32>, vector<64x12xf32>, vector<8x12xf32> -> vector<8x12xf32>
    %c0_9 = arith.constant 0 : index
    %c0_10 = arith.constant 0 : index
    %10 = vector.load %arg4[%c0_9, %c0_10] : memref<1x12xf32, #tpu.memory_space<vmem>>, vector<1x12xf32>
    %11 = vector.broadcast %10 : vector<1x12xf32> to vector<8x12xf32>
    %12 = arith.addf %9, %11 : vector<8x12xf32>
    %c0_11 = arith.constant 0 : index
    %c0_12 = arith.constant 0 : index
    %13 = vector.load %arg5[%c0_11, %c0_12] : memref<8x12xf32, #tpu.memory_space<vmem>>, vector<8x12xf32>
    tpu.vector_store %arg5[%c0_11, %c0_12], %12 {strides = array<i32>} : memref<8x12xf32, #tpu.memory_space<vmem>>, vector<8x12xf32>,
    %14 = arith.mulf %0, %0 : vector<8x16xf32>
    %cst_13 = arith.constant dense<0.000000e+00> : vector<8xf32>
    %15 = vector.multi_reduction <add>, %14, %cst_13 [1] : vector<8x16xf32> to vector<8xf32>
    %16 = vector.shape_cast %15 : vector<8xf32> to vector<8x1xf32>
    %cst_14 = arith.constant 1.000000e-16 : f32
    %17 = vector.broadcast %cst_14 : f32 to vector<8x1xf32>
    %18 = arith.maximumf %16, %17 : vector<8x1xf32>
    %19 = math.rsqrt %18 : vector<8x1xf32>
    %20 = vector.broadcast %19 : vector<8x1xf32> to vector<8x16xf32>
    %21 = arith.mulf %0, %20 : vector<8x16xf32>
    %cst_15 = arith.constant dense<0.000000e+00> : vector<8x8xf32>
    %22 = tpu.matmul %21, %21, %cst_15 {dimension_numbers = #tpu.dot_dimension_numbers<[1], [1], [0], [0], [0, 0, 1, 0], [], []>} : vector<8x16xf32>, vector<8x16xf32>, vector<8x8xf32> -> vector<8x8xf32>
    %23 = tpu.iota {dimensions = array<i32: 0>} : vector<8x8xi32>
    %24 = tpu.iota {dimensions = array<i32: 1>} : vector<8x8xi32>
    %c8_i32 = arith.constant 8 : i32
    %25 = vector.broadcast %c8_i32 : i32 to vector<8x8xi32>
    %26 = arith.cmpi slt, %24, %25 : vector<8x8xi32>
    %27 = arith.cmpi slt, %23, %24 : vector<8x8xi32>
    %28 = arith.andi %27, %26 : vector<8x8xi1>
    %cst_16 = arith.constant 2.000000e-01 : f32
    %29 = vector.broadcast %cst_16 : f32 to vector<8x8xf32>
    %30 = arith.cmpf ogt, %22, %29 : vector<8x8xf32>
    %31 = arith.andi %28, %30 : vector<8x8xi1>
    %32 = arith.extui %31 : vector<8x8xi1> to vector<8x8xi32>
    %c0_17 = arith.constant 0 : index
    %c0_18 = arith.constant 0 : index
    %33 = vector.load %arg6[%c0_17, %c0_18] : memref<8x8xi32, #tpu.memory_space<vmem>>, vector<8x8xi32>
    tpu.vector_store %arg6[%c0_17, %c0_18], %32 {strides = array<i32>} : memref<8x8xi32, #tpu.memory_space<vmem>>, vector<8x8xi32>,
    %34 = arith.cmpi eq, %24, %23 : vector<8x8xi32>
    %cst_19 = arith.constant dense<true> : vector<8x8xi1>
    %35 = arith.xori %26, %cst_19 : vector<8x8xi1>
    %36 = arith.ori %34, %35 : vector<8x8xi1>
    %cst_20 = arith.constant -1.000000e+30 : f32
    %37 = vector.broadcast %cst_20 : f32 to vector<8x8xf32>
    %38 = arith.select %36, %37, %22 : vector<8x8xi1>, vector<8x8xf32>
    %39 = arith.sitofp %24 : vector<8x8xi32> to vector<8x8xf32>
    %cst_21 = arith.constant dense<0xFF800000> : vector<8xf32>
    %40 = vector.multi_reduction <maximumf>, %38, %cst_21 [1] : vector<8x8xf32> to vector<8xf32>
    %41 = vector.shape_cast %40 : vector<8xf32> to vector<8x1xf32>
    %42 = vector.broadcast %41 : vector<8x1xf32> to vector<8x8xf32>
    %43 = arith.cmpf oeq, %38, %42 : vector<8x8xf32>
    %cst_22 = arith.constant 1.000000e+09 : f32
    %44 = vector.broadcast %cst_22 : f32 to vector<8x8xf32>
    %45 = arith.select %43, %39, %44 : vector<8x8xi1>, vector<8x8xf32>
    %cst_23 = arith.constant dense<0x7F800000> : vector<8xf32>
    %46 = vector.multi_reduction <minimumf>, %45, %cst_23 [1] : vector<8x8xf32> to vector<8xf32>
    %47 = vector.shape_cast %46 : vector<8xf32> to vector<8x1xf32>
    %48 = vector.broadcast %47 : vector<8x1xf32> to vector<8x8xf32>
    %49 = arith.cmpf oeq, %39, %48 : vector<8x8xf32>
    %cst_24 = arith.constant -1.000000e+30 : f32
    %50 = vector.broadcast %cst_24 : f32 to vector<8x8xf32>
    %51 = arith.select %49, %50, %38 : vector<8x8xi1>, vector<8x8xf32>
    %cst_25 = arith.constant dense<0xFF800000> : vector<8xf32>
    %52 = vector.multi_reduction <maximumf>, %51, %cst_25 [1] : vector<8x8xf32> to vector<8xf32>
    %53 = vector.shape_cast %52 : vector<8xf32> to vector<8x1xf32>
    %54 = vector.broadcast %53 : vector<8x1xf32> to vector<8x8xf32>
    %55 = arith.cmpf oeq, %51, %54 : vector<8x8xf32>
    %cst_26 = arith.constant 1.000000e+09 : f32
    %56 = vector.broadcast %cst_26 : f32 to vector<8x8xf32>
    %57 = arith.select %55, %39, %56 : vector<8x8xi1>, vector<8x8xf32>
    %cst_27 = arith.constant dense<0x7F800000> : vector<8xf32>
    %58 = vector.multi_reduction <minimumf>, %57, %cst_27 [1] : vector<8x8xf32> to vector<8xf32>
    %59 = vector.shape_cast %58 : vector<8xf32> to vector<8x1xf32>
    %60 = tpu.iota {dimensions = array<i32: 1>} : vector<8x2xi32>
    %c0_i32 = arith.constant 0 : i32
    %61 = vector.broadcast %c0_i32 : i32 to vector<8x2xi32>
    %62 = arith.cmpi eq, %60, %61 : vector<8x2xi32>
    %63 = vector.shape_cast %47 : vector<8x1xf32> to vector<8x1xf32>
    %64 = vector.broadcast %63 : vector<8x1xf32> to vector<8x2xf32>
    %65 = vector.shape_cast %59 : vector<8x1xf32> to vector<8x1xf32>
    %66 = vector.broadcast %65 : vector<8x1xf32> to vector<8x2xf32>
    %67 = arith.select %62, %64, %66 : vector<8x2xi1>, vector<8x2xf32>
    %68 = arith.fptosi %67 : vector<8x2xf32> to vector<8x2xi32>
    %c0_28 = arith.constant 0 : index
    %c0_29 = arith.constant 0 : index
    %69 = vector.load %arg7[%c0_28, %c0_29] : memref<8x2xi32, #tpu.memory_space<vmem>>, vector<8x2xi32>
    tpu.vector_store %arg7[%c0_28, %c0_29], %68 {strides = array<i32>} : memref<8x2xi32, #tpu.memory_space<vmem>>, vector<8x2xi32>,
    return
  }
}

</mosaic_0001>

<bundles_post_ra>
// kernel: graph_decoder_device.1
= control target key start
LH: loop header
LB: loop body
LE: loop exit
PB: predicated region body
PF: predicated region fallthrough
CT: control target
= control target key end

     0   :  { %13 = vsyncpa [#allocation3], 0  ;;  %vm35_vm0 = vcmask 130048   ;;  %s607_s0 = inlined_call_operand.vmem [shape: f32[8,16], index: 0, kind: input, shape index: {}]   ;;  %s608_s1 = inlined_call_operand.vmem [shape: f32[16,64], index: 1, kind: input, shape index: {}]   ;;  %s609_s2 = inlined_call_operand.vmem [shape: f32[1,64], index: 2, kind: input, shape index: {}]   ;;  %s610_s3 = inlined_call_operand.vmem [shape: f32[64,12], index: 3, kind: input, shape index: {}]   ;;  %s611_s4 = inlined_call_operand.vmem [shape: f32[1,12], index: 4, kind: input, shape index: {}]   ;;  %s612_s5 = inlined_call_operand.hbm [shape: f32[8,12], index: 5, kind: output, shape index: {0}]   ;;  %s613_s6 = inlined_call_operand.hbm [shape: s32[8,8], index: 6, kind: output, shape index: {1}]   ;;  %s614_s7 = inlined_call_operand.vmem [shape: s32[8,2], index: 7, kind: output, shape index: {2}]  }
   0x1   :  { %v25_v0 = vld [vmem:[%s607_s0] sm:$0xff] }
   0x2   :  { %14 = vsyncpa [#allocation5], 0  ;;  %v201_v1 = vmul.f32 %v25_v0, %v25_v0  ;;  %v26_v3 = vld [vmem:[%s608_s1] sm:$0xff]  ;;  %v27_v4 = vld [vmem:[%s608_s1 + $0x8] sm:$0xff]  ;;  %v478_v5 = vmov 0.0|0.0   ;;  %vm479_vm1 = vmmov 0   ;;  %v281_v29 = vlaneseq }
   0x3   :  { %404 = vmatprep.subr.bf16.mxu0 %v478_v5  ;;  %v405_v6 = vpack.c.bf16 %v27_v4, %v26_v3  ;;  %v480_v7 = vmov 0.0   ;;  %407 = vmatprep.subr.bf16.mxu1 %v478_v5  ;;  %v110_v8 = vld [vmem:[%s610_s3] sm:$0xff]  ;;  %v111_v9 = vld [vmem:[%s610_s3 + $0x8] sm:$0xff]  ;;  %v112_v10 = vld [vmem:[%s610_s3 + $0x10] sm:$0xff]  ;;  %vm125_vm2 = vcmask 523264   ;;  %vm481_vm5 = vmmov 1  }
   0x4   :  { %v202_v2 = vsel %vm35_vm0, %v201_v1, 0.0  ;;  %377 = vmatprep.mubr.msk.f32.mxu0 %vm479_vm1, %v480_v7  ;;  %396 = vmatprep.mubr.msk.f32.mxu1 %vm479_vm1, %v480_v7  ;;  %v408_v11 = vpack.c.bf16 %v111_v9, %v110_v8  ;;  %v113_v12 = vld [vmem:[%s610_s3 + $0x18] sm:$0xff]  ;;  %v114_v14 = vld [vmem:[%s610_s3 + $0x20] sm:$0xff]  ;;  %v115_v15 = vld [vmem:[%s610_s3 + $0x28] sm:$0xff]  ;;  %v565_v30 = vand.u32 127, %v281_v29  ;;  %v282_v31 = vshrl.u32 %v281_v29, 7 }
   0x5   :  { %203 = vadd.xlane.f32.xlu0 %v202_v2  ;;  %406 = vmatpush3.bf16.msra.mxu0 %v405_v6  ;;  %v411_v13 = vpack.c.bf16 %v113_v12, %v112_v10  ;;  %v414_v16 = vpack.c.bf16 %v115_v15, %v114_v14  ;;  %v116_v17 = vld [vmem:[%s610_s3 + $0x30] sm:$0xff]  ;;  %v117_v18 = vld [vmem:[%s610_s3 + $0x38] sm:$0xff]  ;;  %v353_v24 = vld [vmem:[%s609_s2] ss:$0 sm:$0xff]  ;;  %vm291_vm10 = vcmask 64512   ;;  %v482_v36 = vmov 0  }
   0x6   :  { %399 = vmatprep.subr.mxu0 %v480_v7  ;;  %409 = vmatpush3.bf16.msra.mxu1 %v408_v11  ;;  %v417_v19 = vpack.c.bf16 %v117_v18, %v116_v17  ;;  %vm285_vm3 = vcmp.lt.s32.totalorder %v565_v30, 8  ;;  %vm293_vm4 = vcmp.eq.s32.totalorder %v565_v30, %v282_v31  ;;  %vm286_vm7 = vcmp.lt.s32.totalorder %v282_v31, %v565_v30  ;;  %v355_v38 = vld [vmem:[%s611_s4] ss:$0 sm:$0xff]  ;;  %s483_s4 = smov [#allocation2]   ;;  %s484_s24 = smov [#allocation4]  }
   0x7   :  { %410 = vmatprep.subr.bf16.mxu1 %v478_v5  ;;  %vm294_vm6 = vmxor %vm285_vm3, %vm481_vm5  ;;  %vm199_vm13 = vcmask 97280   ;;  %v297_v42 = vcvt.s32.f32 %v565_v30  ;;  %s327_s23 = sshll.u32 %s483_s4, 4  ;;  %s337_s25 = sshll.u32 %s484_s24, 4  ;;  %s328_s23 = int_to_ptr.vmem [resolvable:$true] %s327_s23  ;;  %s338_s25 = int_to_ptr.vmem [resolvable:$true] %s337_s25 }
   0x8   :  { %378 = vmatmul.mubr.msk.f32.vlgmr.msra.gmra.mrb[0].mxu0 %vm35_vm0, %v25_v0  ;;  %vm295_vm8 = vmor %vm293_vm4, %vm294_vm6  ;;  %s430_s26 = scalar_lea.vmem %s328_s23, 128  ;;  %p435_p1 = scmp.lt.s32.totalorder %s328_s23, %s328_s23 }
   0x9   :  { %401 = vmatprep.mubr.msk.f32.mxu0 %vm479_vm1, %v480_v7  ;;  %vm287_vm9 = vmand %vm286_vm7, %vm285_vm3  ;;  %p431_p0 = scmp.ne.s32.totalorder %s328_s23, %s430_s26  ;;  %p436_p2 = scmp.lt.s32.totalorder %s430_s26, %s430_s26 }
   0xa   :  { %412 = vmatpush3.bf16.msra.mxu1 %v411_v13 }
   0xb   :  { %413 = vmatprep.subr.bf16.mxu1 %v478_v5  ;;  %p437_p3 = por %p436_p2, %p435_p1 }
   0xd   :  { %p438_p4 = pnand %p437_p3, %p431_p0 }
   0xe   :  { %415 = vmatpush3.bf16.msra.mxu1 %v414_v16 }
   0xf   :  { %416 = vmatprep.subr.bf16.mxu1 %v478_v5 }
  0x12   :  { %418 = vmatpush3.bf16.msra.mxu1 %v417_v19 }
  0x92   :  { %v204_v20 = vpop.xlane.xlu0 %203 }
  0x93   :  { %v205_v21 = vmax.f32 %v204_v20, 1e-16 }
  0x95   :  { %428 = vrsqrt.f32 %v205_v21 }
  0x9f   :  { %v429_v22 = vpop.eup %428 }
  0xa0   :  { %v207_v23 = vmul.f32 %v429_v22, %v25_v0 }
  0xa2   :  { %400 = vmatpush3.xpose.msk.msra.mxu0 %vm35_vm0, %v207_v23 }
  0xa5   :  { %402 = vmatmul.mubr.msk.f32.vlgmr.msra.gmra.mrb[2].mxu0 %vm35_vm0, %v207_v23 }
  0xdb   :  { %v105_v25 = vpop.f32.mrb[0].mxu0 }
  0xdc   :  { %v379_v26 = vpop.f32.mrb[1].mxu0  ;;  %v106_v27 = vadd.f32 %v353_v24, %v105_v25 }
  0xde   :  { %v109_v28 = vmax.f32 %v106_v27, 0.0 }
  0xe0   :  { %397 = vmatmul.mubr.msk.f32.vlgmr.msra.gmra.mrb[0].mxu1 %vm125_vm2, %v109_v28 }
 0x178   :  { %v277_v32 = vpop.f32.mrb[2].mxu0 }
 0x179   :  { %vm288_vm11 = vcmp.gt.f32.partialorder %v277_v32, 0.2  ;;  %v296_v33 = vsel %vm295_vm8, -1e+30, %v277_v32  ;;  %v403_v34 = vpop.f32.mrb[3].mxu0 }
 0x17a   :  { %vm289_vm12 = vmand %vm287_vm9, %vm288_vm11  ;;  %v298_v35 = vsel %vm291_vm10, %v296_v33, -inf }
 0x17b   :  { %299 = vmax.xlane.f32.xlu0 %v298_v35  ;;  %v290_v37 = vsel %vm289_vm12, 1, %v482_v36 }
 0x17c   :  { %292 = vst.msk [vmem:[#allocation4] sm:$0xff] %vm291_vm10, %v290_v37 }
 0x1b3   :  { %v195_v39 = vpop.f32.mrb[0].mxu1 }
 0x1b4   :  { %v196_v40 = vadd.f32 %v355_v38, %v195_v39  ;;  %v398_v41 = vpop.f32.mrb[1].mxu1 }
 0x1b6   :  { %200 = vst.msk [vmem:[#allocation2] sm:$0xff] %vm199_vm13, %v196_v40 }
 0x208   :  { %v300_v43 = vpop.xlane.xlu0 %299 }
 0x209   :  { %vm301_vm14 = vcmp.eq.f32.partialorder %v296_v33, %v300_v43 }
 0x20a   :  { %v302_v44 = vsel %vm301_vm14, %v297_v42, 1e+09 }
 0x20b   :  { %v303_v45 = vsel %vm291_vm10, %v302_v44, inf }
 0x20c   :  { %304 = vmin.xlane.f32.xlu1 %v303_v45 }
 0x299   :  { %v305_v46 = vpop.xlane.xlu1 %304 }
 0x29a   :  { %vm306_vm15 = vcmp.eq.f32.partialorder %v297_v42, %v305_v46 }
 0x29b   :  { %v307_v47 = vsel %vm306_vm15, -1e+30, %v296_v33 }
 0x29c   :  { %v308_v48 = vsel %vm291_vm10, %v307_v47, -inf }
 0x29d   :  { %309 = vmax.xlane.f32.xlu1 %v308_v48 }
 0x32a   :  { %v310_v49 = vpop.xlane.xlu1 %309 }
 0x32b   :  { %vm311_vm0 = vcmp.eq.f32.partialorder %v307_v47, %v310_v49 }
 0x32c   :  { %v312_v50 = vsel %vm311_vm0, %v297_v42, 1e+09 }
 0x32d   :  { %v313_v51 = vsel %vm291_vm10, %v312_v50, inf }
 0x32e   :  { %314 = vmin.xlane.f32.xlu0 %v313_v51 }
 0x32f   :  { %441 = shalt.err (!%p438_p4)
}
 0x330   :  { %s442_s29 = scalar_lea.hbm %s612_s5, 128 }
 0x331   :  { %p443_p5 = scmp.ne.s32.totalorder %s612_s5, %s442_s29  ;;  %p446_p6 = scmp.lt.u32.totalorder %s442_s29, %s612_s5 }
 0x333   :  { %p448_p7 = pnand %p446_p6, %p443_p5 }
 0x335   :  { %451 = shalt.err (!%p448_p7)
}
 0x336   :  { %330 = dma.vmem_to_hbm [thread:$0]  %s328_s23, 128, %s612_s5, [#allocation3]  }
 0x337   :  { %s452_s11 = scalar_lea.vmem %s338_s25, 128  ;;  %p457_p9 = scmp.lt.s32.totalorder %s338_s25, %s338_s25 }
 0x338   :  { %p453_p8 = scmp.ne.s32.totalorder %s338_s25, %s452_s11  ;;  %p458_p10 = scmp.lt.s32.totalorder %s452_s11, %s452_s11 }
 0x33a   :  { %p459_p11 = por %p458_p10, %p457_p9 }
 0x33c   :  { %p460_p12 = pnand %p459_p11, %p453_p8 }
 0x33e   :  { %463 = shalt.err (!%p460_p12)
}
 0x33f   :  { %s464_s14 = scalar_lea.hbm %s613_s6, 128 }
 0x340   :  { %p465_p13 = scmp.ne.s32.totalorder %s613_s6, %s464_s14  ;;  %p468_p0 = scmp.lt.u32.totalorder %s464_s14, %s613_s6 }
 0x342   :  { %p470_p1 = pnand %p468_p0, %p465_p13 }
 0x344   :  { %473 = shalt.err (!%p470_p1)
}
 0x345   :  { %340 = dma.vmem_to_hbm [thread:$0]  %s338_s25, 128, %s613_s6, [#allocation5]   ;;  %vm316_vm1 = vcmp.eq.s32.totalorder %v565_v30, 0  ;;  %vm319_vm2 = vcmask 15360  }
 0x3bb   :  { %v315_v52 = vpop.xlane.xlu0 %314 }
 0x3bc   :  { %v317_v53 = vsel %vm316_vm1, %v305_v46, %v315_v52 }
 0x3bd   :  { %v419_v54 = vtrunc.f32 %v317_v53 }
 0x3bf   :  { %v420_v55 = vcvt.f32.s32 %v419_v54 }
 0x3c1   :  { %320 = vst.msk [vmem:[%s614_s7] sm:$0xff] %vm319_vm2, %v420_v55 }
 0x3c2   :  { %474 = dma.done.wait [#allocation3], 128  }
 0x3c3   :  { %475 = vsyncadd [#allocation3], 4294967168 }
 0x3c4   :  { %476 = dma.done.wait [#allocation5], 128  }
 0x3c5   :  { %477 = vsyncadd [#allocation5], 4294967168 }
 0x3c6   :  { %351 = vsyncpa [#allocation3], 1 }
 0x3c7   :  { %352 = vsyncpa [#allocation5], 1 }

</bundles_post_ra>
